<compile_context>
chip_gen: v6e
topology: v6e:2x2x1
jax: 0.10.0
libtpu: 0.0.40
codegen_flags: <defaults>
</compile_context>

<pallas_src>
import functools

import jax
import jax.numpy as jnp
from jax.experimental import pallas as pl
from jax.experimental.pallas import tpu as pltpu

_LANE = 128
_SUBLANE = 8
_VMEM_BUDGET = 40 << 20       # target double-buffered working-set budget
_VMEM_LIMIT_CAP = 56 << 20    # stay below v7x's 64 MiB physical VMEM
_TK_MULTI = 2048              # K tile when the full depth does not fit VMEM


def _round_up(x: int, m: int) -> int:
    return ((x + m - 1) // m) * m


def _single_k_footprint(tm, d, cpad, in_bytes, out_bytes):
    # x tile + W (both double-buffered) + bias + out tile (double-buffered).
    return (2 * tm * d * in_bytes + 2 * d * cpad * in_bytes
            + 2 * cpad * 4 + 2 * tm * cpad * out_bytes)


def _multi_k_footprint(tm, tk, cpad, in_bytes, out_bytes):
    return (2 * tm * tk * in_bytes + 2 * tk * cpad * in_bytes
            + 2 * cpad * 4 + 2 * tm * cpad * out_bytes + tm * cpad * 4)


def _pick_tm(bp: int) -> int:
    """Largest multiple-of-8 divisor of bp, <= 512, preferring >= 2 batch tiles
    so v7x's 2 TensorCores both get work (no effect on v5e/v6e, 1 TC)."""
    cap = min(512, bp)
    if bp >= 2 * _SUBLANE:
        cap = min(cap, bp // 2)
    tm = _SUBLANE
    for cand in range(_SUBLANE, cap + 1, _SUBLANE):
        if bp % cand == 0:
            tm = cand
    return tm


# ---------------------------------------------------------------------------
# Kernels
# ---------------------------------------------------------------------------
def _linear_kernel_single_k(x_ref, w_ref, b_ref, o_ref):
    # x_ref: (TM, D), w_ref: (D, Cpad), b_ref: (1, Cpad), o_ref: (TM, Cpad).
    # One MXU pass; no scratch, no accumulator traffic, single dense store.
    o_ref[...] = (
        jnp.dot(x_ref[...], w_ref[...], preferred_element_type=jnp.float32)
        + b_ref[...]
    ).astype(o_ref.dtype)


def _linear_kernel_multi_k(x_ref, w_ref, b_ref, o_ref, acc_ref):
    # x_ref: (TM, TK), w_ref: (TK, Cpad), acc_ref: (TM, Cpad) f32 scratch.
    # Only used when the K grid has >= 2 steps.
    k = pl.program_id(1)
    nk = pl.num_programs(1)
    part = jnp.dot(x_ref[...], w_ref[...], preferred_element_type=jnp.float32)

    @pl.when(k == 0)
    def _():
        acc_ref[...] = part                       # assign, not zero-then-add

    @pl.when(jnp.logical_and(k > 0, k < nk - 1))
    def _():
        acc_ref[...] = acc_ref[...] + part

    @pl.when(k == nk - 1)
    def _():
        # Fold the last partial product straight into the epilogue: one fewer
        # full write+read of the (TM, Cpad) f32 accumulator per batch tile.
        o_ref[...] = (acc_ref[...] + part + b_ref[...]).astype(o_ref.dtype)


# ---------------------------------------------------------------------------
# One-time parameter repack
# ---------------------------------------------------------------------------
def prepare_params(weight, bias, *, compute_dtype=jnp.float32):
    """Transpose W to (D[pad], Cpad) and lane-pad classes, once at load time.

    compute_dtype=jnp.bfloat16 halves x/W HBM traffic (MXU still accumulates
    in f32); bias stays f32 so the epilogue is f32 on every generation.
    If the full depth won't fit the VMEM budget, the depth is zero-padded to a
    multiple of the K tile so the ragged last K block never reads past w_t.
    """
    C, D = weight.shape
    Cpad = _round_up(C, _LANE)
    in_bytes = jnp.dtype(compute_dtype).itemsize
    if _single_k_footprint(512, D, Cpad, in_bytes, 4) <= _VMEM_BUDGET:
        Dp = D                               # single-K path: W fully resident
    else:
        Dp = _round_up(D, _TK_MULTI)         # K-tiled path needs padded depth
    w_t = jnp.zeros((Dp, Cpad), compute_dtype).at[:D, :C].set(
        weight.T.astype(compute_dtype))
    b2d = jnp.zeros((1, Cpad), jnp.float32).at[0, :C].set(
        bias.astype(jnp.float32))
    return w_t, b2d


# ---------------------------------------------------------------------------
# Forward
# ---------------------------------------------------------------------------
@functools.partial(jax.jit, static_argnames=("n_classes",))
def linear_classifier_forward(x, w_t, b2d, *, n_classes: int):
    """y = x @ W.T + b with W/b repacked by prepare_params.

    x:   (B, D)
    w_t: (Dp, Cpad) pre-transposed, lane-padded (and depth-padded if needed)
    b2d: (1, Cpad) f32
    returns (B, n_classes) float32
    """
    B, D = x.shape
    Dp, Cpad = w_t.shape
    assert Dp >= D and Cpad % _LANE == 0 and n_classes <= Cpad

    in_bytes = w_t.dtype.itemsize
    out_dtype = jnp.float32
    out_bytes = jnp.dtype(out_dtype).itemsize

    # Batch: pad only to the 8-row sublane multiple (<= 7 extra rows); TM is a
    # divisor of Bp, so no large materialized batch pad is ever created.
    Bp = _round_up(B, _SUBLANE)
    TM = _pick_tm(Bp)

    # K policy: single step whenever the full-depth tiles fit the VMEM budget.
    single_k = (
        _single_k_footprint(TM, Dp, Cpad, in_bytes, out_bytes) <= _VMEM_BUDGET
    )

    xp = x.astype(w_t.dtype)
    if (Bp, Dp) != (B, D):
        # Only the depth pad needs real zeros (padded K columns meet zero
        # weight rows); the batch pad rows are sliced off below.
        xp = jnp.pad(xp, ((0, Bp - B), (0, Dp - D)))

    if single_k:
        grid = (Bp // TM,)
        in_specs = [
            pl.BlockSpec((TM, Dp), lambda i: (i, 0)),
            pl.BlockSpec((Dp, Cpad), lambda i: (0, 0)),   # W resident in VMEM
            pl.BlockSpec((1, Cpad), lambda i: (0, 0)),
        ]
        out_specs = pl.BlockSpec((TM, Cpad), lambda i: (i, 0))
        scratch_shapes = []
        kernel = _linear_kernel_single_k
        dim_sem = ("parallel",)
        footprint = _single_k_footprint(TM, Dp, Cpad, in_bytes, out_bytes)
    else:
        TK = _TK_MULTI
        assert Dp % TK == 0
        grid = (Bp // TM, Dp // TK)
        in_specs = [
            pl.BlockSpec((TM, TK), lambda i, k: (i, k)),
            pl.BlockSpec((TK, Cpad), lambda i, k: (k, 0)),
            pl.BlockSpec((1, Cpad), lambda i, k: (0, 0)),
        ]
        out_specs = pl.BlockSpec((TM, Cpad), lambda i, k: (i, 0))
        scratch_shapes = [pltpu.VMEM((TM, Cpad), jnp.float32)]
        kernel = _linear_kernel_multi_k
        dim_sem = ("parallel", "arbitrary")
        footprint = _multi_k_footprint(TM, TK, Cpad, in_bytes, out_bytes)

    vmem_limit = int(min(_VMEM_LIMIT_CAP, max(32 << 20, footprint + (4 << 20))))

    flops = 2 * Bp * Dp * Cpad
    bytes_accessed = (Bp * Dp * in_bytes + Dp * Cpad * in_bytes
                      + Cpad * 4 + Bp * Cpad * out_bytes)

    out = pl.pallas_call(
        kernel,
        out_shape=jax.ShapeDtypeStruct((Bp, Cpad), out_dtype),
        grid_spec=pltpu.PrefetchScalarGridSpec(
            num_scalar_prefetch=0,
            grid=grid,
            in_specs=in_specs,
            out_specs=out_specs,
            scratch_shapes=scratch_shapes,
        ),
        compiler_params=pltpu.CompilerParams(
            dimension_semantics=dim_sem,
            vmem_limit_bytes=vmem_limit,
        ),
        cost_estimate=pl.CostEstimate(
            flops=flops, transcendentals=0, bytes_accessed=bytes_accessed
        ),
    )(xp, w_t, b2d)

    # TODO(synk): fuse the downstream class-dim reduction into the kernel
    # epilogue instead of this Cpad-amplified writeback + slice.
    return out[:B, :n_classes]


if __name__ == "__main__":
    # Small shapes consistent with the module: batch=8, in_dim=32, n_classes=5
    B, in_dim, n_classes = 8, 32, 5

    key = jax.random.PRNGKey(0)
    kx, kw, kb = jax.random.split(key, 3)

    # Deterministic init mimicking nn.Linear's uniform(-1/sqrt(D), 1/sqrt(D))
    bound = 1.0 / jnp.sqrt(jnp.float32(in_dim))
    weight = jax.random.uniform(kw, (n_classes, in_dim), jnp.float32,
                                minval=-bound, maxval=bound)
    bias = jax.random.uniform(kb, (n_classes,), jnp.float32,
                              minval=-bound, maxval=bound)
    x = jax.random.normal(kx, (B, in_dim), jnp.float32)

    ref = x @ weight.T + bias

    # f32 path
    w_t, b2d = prepare_params(weight, bias)
    out = jax.block_until_ready(
        linear_classifier_forward(x, w_t, b2d, n_classes=n_classes))
    assert out.shape == (B, n_classes)
    assert jnp.allclose(out, ref, atol=1e-5, rtol=1e-5)

    # bf16 input path (halved x/W HBM traffic, f32 accumulation + epilogue)
    w_bt, b_bt = prepare_params(weight, bias, compute_dtype=jnp.bfloat16)
    out_bf16 = jax.block_until_ready(
        linear_classifier_forward(x, w_bt, b_bt, n_classes=n_classes))
    assert out_bf16.shape == (B, n_classes)
    assert jnp.allclose(out_bf16, ref, atol=1e-1, rtol=1e-1)

    print("KERNEL_OK")
</pallas_src>

<mosaic_0001>
module attributes {stable_mosaic.version = 11 : i64} {
  func.func @_linear_kernel_single_k(%arg0: i32, %arg1: memref<8x32xf32, #tpu.memory_space<vmem>>, %arg2: memref<32x128xf32, #tpu.memory_space<vmem>>, %arg3: memref<1x128xf32, #tpu.memory_space<vmem>>, %arg4: memref<8x128xf32, #tpu.memory_space<vmem>>) attributes {dimension_semantics = [#tpu.dimension_semantics<parallel>], iteration_bounds = array<i64: 1>, scalar_prefetch = 0 : i64, scratch_operands = 0 : i64, tpu.core_type = #tpu.core_type<tc>, window_params = [{transform_indices = @transform_0, window_bounds = array<i64: 8, 32>}, {pipeline_mode = #tpu.pipeline_mode<synchronous>, transform_indices = @transform_1, window_bounds = array<i64: 32, 128>}, {pipeline_mode = #tpu.pipeline_mode<synchronous>, transform_indices = @transform_2, window_bounds = array<i64: 1, 128>}, {transform_indices = @transform_3, window_bounds = array<i64: 8, 128>}]} {
    %c0 = arith.constant 0 : index
    %c0_0 = arith.constant 0 : index
    %0 = vector.load %arg1[%c0, %c0_0] : memref<8x32xf32, #tpu.memory_space<vmem>>, vector<8x32xf32>
    %c0_1 = arith.constant 0 : index
    %c0_2 = arith.constant 0 : index
    %1 = vector.load %arg2[%c0_1, %c0_2] : memref<32x128xf32, #tpu.memory_space<vmem>>, vector<32x128xf32>
    %cst = arith.constant dense<0.000000e+00> : vector<8x128xf32>
    %2 = tpu.matmul %0, %1, %cst {dimension_numbers = #tpu.dot_dimension_numbers<[1], [0], [0], [1], [0, 0, 1, 1], [], []>} : vector<8x32xf32>, vector<32x128xf32>, vector<8x128xf32> -> vector<8x128xf32>
    %c0_3 = arith.constant 0 : index
    %c0_4 = arith.constant 0 : index
    %3 = vector.load %arg3[%c0_3, %c0_4] : memref<1x128xf32, #tpu.memory_space<vmem>>, vector<1x128xf32>
    %4 = vector.broadcast %3 : vector<1x128xf32> to vector<8x128xf32>
    %5 = arith.addf %2, %4 : vector<8x128xf32>
    %c0_5 = arith.constant 0 : index
    %c0_6 = arith.constant 0 : index
    %6 = vector.load %arg4[%c0_5, %c0_6] : memref<8x128xf32, #tpu.memory_space<vmem>>, vector<8x128xf32>
    tpu.vector_store %arg4[%c0_5, %c0_6], %5 {strides = array<i32>} : memref<8x128xf32, #tpu.memory_space<vmem>>, vector<8x128xf32>,
    return
  }
  func.func @transform_0(%arg0: i32) -> (i32, i32) {
    %c0_i32 = arith.constant 0 : i32
    %c0_i32_0 = arith.constant 0 : i32
    return %arg0, %c0_i32 : i32, i32
  }
  func.func @transform_1(%arg0: i32) -> (i32, i32) {
    %c0_i32 = arith.constant 0 : i32
    %c0_i32_0 = arith.constant 0 : i32
    %c0_i32_1 = arith.constant 0 : i32
    return %c0_i32, %c0_i32_0 : i32, i32
  }
  func.func @transform_2(%arg0: i32) -> (i32, i32) {
    %c0_i32 = arith.constant 0 : i32
    %c0_i32_0 = arith.constant 0 : i32
    %c0_i32_1 = arith.constant 0 : i32
    return %c0_i32, %c0_i32_0 : i32, i32
  }
  func.func @transform_3(%arg0: i32) -> (i32, i32) {
    %c0_i32 = arith.constant 0 : i32
    %c0_i32_0 = arith.constant 0 : i32
    return %arg0, %c0_i32 : i32, i32
  }
}

</mosaic_0001>

<bundles_post_ra>
// kernel: linear_classifier_forward.1
= control target key start
LH: loop header
LB: loop body
LE: loop exit
PB: predicated region body
PF: predicated region fallthrough
CT: control target
= control target key end

     0   :  { %8 = vsyncpa [#allocation3], 0  ;;  %s274_s0 = inlined_call_operand.hbm [shape: f32[8,32], index: 0, kind: input, shape index: {}]   ;;  %s275_s1 = inlined_call_operand.hbm [shape: f32[32,128], index: 1, kind: input, shape index: {}]   ;;  %s276_s2 = inlined_call_operand.vmem [shape: f32[1,128], index: 2, kind: input, shape index: {}]   ;;  %s277_s3 = inlined_call_operand.hbm [shape: f32[8,128], index: 3, kind: output, shape index: {}]  }
   0x1   :  { %9 = vsyncpa [#allocation6], 0 }
   0x2   :  { %10 = vsyncpa [#allocation4], 0  ;;  %s235_s12 = smov [#allocation2]   ;;  %s236_s14 = smov [#allocation5]  }
   0x3   :  { %s17_s13 = sshll.u32 %s235_s12, 4  ;;  %s26_s15 = sshll.u32 %s236_s14, 4  ;;  %s18_s13 = int_to_ptr.vmem [resolvable:$true] %s17_s13  ;;  %s27_s15 = int_to_ptr.vmem [resolvable:$true] %s26_s15 }
   0x4   :  { %s177_s16 = scalar_lea.vmem %s18_s13, 128  ;;  %p182_p1 = scmp.lt.s32.totalorder %s18_s13, %s18_s13 }
   0x5   :  { %p178_p0 = scmp.ne.s32.totalorder %s18_s13, %s177_s16  ;;  %p183_p2 = scmp.lt.s32.totalorder %s177_s16, %s177_s16 }
   0x7   :  { %p184_p3 = por %p183_p2, %p182_p1 }
   0x9   :  { %p185_p4 = pnand %p184_p3, %p178_p0 }
   0xb   :  { %188 = shalt.err (!%p185_p4)
}
   0xc   :  { %20 = dma.hbm_to_vmem [thread:$0]  %s274_s0, 128, %s18_s13, [#allocation3]  }
   0xd   :  { %s197_s19 = scalar_lea.vmem %s27_s15, 512  ;;  %p202_p6 = scmp.lt.s32.totalorder %s27_s15, %s27_s15 }
   0xe   :  { %p198_p5 = scmp.ne.s32.totalorder %s27_s15, %s197_s19  ;;  %p203_p7 = scmp.lt.s32.totalorder %s197_s19, %s197_s19 }
  0x10   :  { %p204_p8 = por %p203_p7, %p202_p6 }
  0x12   :  { %p205_p9 = pnand %p204_p8, %p198_p5 }
  0x14   :  { %208 = shalt.err (!%p205_p9)
}
  0x15   :  { %s237_s20 = smov 128   ;;  %s238_s21 = smov 8  }
  0x16   :  { %32 = dma.hbm_to_vmem [thread:$0]  %s275_s1, 512, %s27_s15, [#allocation6], %s237_s20, %s237_s20, %s238_s21  }
  0x17   :  { %229 = dma.done.wait [#allocation3], 128  }
  0x18   :  { %230 = vsyncadd [#allocation3], 4294967168 }
  0x19   :  { %231 = dma.done.wait [#allocation6], 512  }
  0x1a   :  { %232 = vsyncadd [#allocation6], 4294966784  ;;  %v239_v0 = vmov 0.0   ;;  %vm240_vm0 = vmmov 0   ;;  %v45_v1 = vld [vmem:[#allocation5 + $0x18] sm:$0xff]  ;;  %v44_v2 = vld [vmem:[#allocation5 + $0x10] sm:$0xff] }
  0x1b   :  { %151 = vmatprep.subr.mxu0 %v239_v0  ;;  %159 = vmatprep.mubr.msk.f32.mxu0 %vm240_vm0, %v239_v0  ;;  %v43_v3 = vld [vmem:[#allocation5 + $0x8] sm:$0xff]  ;;  %v42_v4 = vld [vmem:[#allocation5] sm:$0xff]  ;;  %v41_v5 = vld [vmem:[#allocation2] sm:$0xff]  ;;  %vm53_vm1 = vcmask 261120   ;;  %s241_s24 = smov [#allocation7]  }
  0x1c   :  { %152 = vmatpush3.msra.mxu0 %v45_v1  ;;  %v144_v6 = vld [vmem:[%s276_s2] ss:$0 sm:$0xff]  ;;  %s134_s25 = sshll.u32 %s241_s24, 4  ;;  %s135_s25 = int_to_ptr.vmem [resolvable:$true] %s134_s25 }
  0x1d   :  { %153 = vmatprep.subr.mxu0 %v239_v0  ;;  %s209_s26 = scalar_lea.vmem %s135_s25, 128  ;;  %p214_p11 = scmp.lt.s32.totalorder %s135_s25, %s135_s25 }
  0x1e   :  { %154 = vmatpush3.msra.mxu0 %v44_v2  ;;  %p210_p10 = scmp.ne.s32.totalorder %s135_s25, %s209_s26  ;;  %p215_p12 = scmp.lt.s32.totalorder %s209_s26, %s209_s26 }
  0x1f   :  { %155 = vmatprep.subr.mxu0 %v239_v0 }
  0x20   :  { %156 = vmatpush3.msra.mxu0 %v43_v3  ;;  %p216_p13 = por %p215_p12, %p214_p11 }
  0x21   :  { %157 = vmatprep.subr.mxu0 %v239_v0 }
  0x22   :  { %158 = vmatpush3.msra.mxu0 %v42_v4  ;;  %p217_p0 = pnand %p216_p13, %p210_p10 }
  0x23   :  { %160 = vmatmul.mubr.msk.f32.vlgmr.msra.gmra.mxu0 %vm53_vm1, %v41_v5 }
  0xe3   :  { %v123_v7 = vpop.f32.mrf.mxu0 }
  0xe4   :  { %v124_v8 = vadd.f32 %v144_v6, %v123_v7 }
  0xe5   :  { %v161_v9 = vpop.f32.mrf.mxu0 }
  0xe6   :  { %127 = vst [vmem:[#allocation7] sm:$0xff] %v124_v8 }
  0xe7   :  { %220 = shalt.err (!%p217_p0)
}
  0xe8   :  { %137 = dma.vmem_to_hbm [thread:$0]  %s135_s25, 128, %s277_s3, [#allocation4]  }
  0xe9   :  { %233 = dma.done.wait [#allocation4], 128  }
  0xea   :  { %234 = vsyncadd [#allocation4], 4294967168 }
  0xeb   :  { %141 = vsyncpa [#allocation3], 1 }
  0xec   :  { %142 = vsyncpa [#allocation6], 1 }
  0xed   :  { %143 = vsyncpa [#allocation4], 1 }

</bundles_post_ra>
